<compile_context>
chip_gen: v7x
topology: tpu7x:2x2x1
jax: 0.10.0
libtpu: 0.0.40
codegen_flags: <defaults>
</compile_context>

<pallas_src>
import functools

import jax
import jax.numpy as jnp
from jax.experimental import pallas as pl
from jax.experimental.pallas import tpu as pltpu

_LANE = 128      # vreg lane width
_SUBLANE = 8     # vreg sublane count (f32)


def _round_up(x: int, m: int) -> int:
    return (x + m - 1) // m * m


def _mlp_kernel(x_ref, w1_ref, b1_ref, w2_ref, b2_ref, o_ref):
    # layer_1: Linear + ReLU  (MXU matmul, f32 accumulation; bias/ReLU on VPU in f32)
    h = jnp.dot(x_ref[...], w1_ref[...], preferred_element_type=jnp.float32)
    h = jnp.maximum(h + b1_ref[...], 0.0)
    # milp_model: NamedLinear (plain Linear).  Only downcast the f32 activations
    # when the weights are lower precision (bf16 deployment path).
    if w2_ref.dtype != jnp.float32:
        h = h.astype(w2_ref.dtype)
    # Lane-dense (tb, 128) compute in VMEM; only the real out_dim columns are
    # stored to the (unpadded) HBM output.
    y = jnp.dot(h, w2_ref[...], preferred_element_type=jnp.float32)
    out_dim = o_ref.shape[-1]
    o_ref[...] = (y[:, :out_dim] + b2_ref[...]).astype(o_ref.dtype)


@functools.partial(jax.jit, static_argnames=("tile_b",))
def simple_classification_forward(x, w1, b1, w2, b2, *, tile_b=4096):
    """x: (B, input_dim); w1: (input_dim, inter); b1: (1, inter);
       w2: (inter, output_dim); b2: (1, output_dim).  Returns (B, output_dim)."""
    B, input_dim = x.shape
    inter = w1.shape[1]
    out_dim = w2.shape[1]

    # ---- lane-pad the *intermediate* feature dims only (zero padding is exact:
    # zero w1/b1 cols -> zero h cols; relu(0)=0; zero w2 rows contribute nothing).
    # The output itself is NOT padded in HBM; padded w2 columns are computed in
    # VMEM and dropped at the store. ------------------------------------------
    inter_p = _round_up(inter, _LANE)
    out_p = _round_up(out_dim, _LANE)
    w1p = jnp.pad(w1, ((0, 0), (0, inter_p - inter)))
    b1p = jnp.pad(b1, ((0, 0), (0, inter_p - inter)))
    w2p = jnp.pad(w2, ((0, inter_p - inter), (0, out_p - out_dim)))
    # b2 stays unpadded: the kernel only stores the real out_dim columns.

    # ---- batch tile: big enough to amortize per-step grid overhead, capped so
    # the grid keeps >= 2 steps (v7x megacore), sublane-aligned, no wrapper pad.
    tb = _round_up(min(tile_b, max(B, 1)), _SUBLANE)
    if B > 2 * _SUBLANE:
        tb = min(tb, _round_up(pl.cdiv(B, 2), _SUBLANE))
    grid = (pl.cdiv(B, tb),)   # partial last block handled by Pallas write masking

    x_bytes = B * input_dim * x.dtype.itemsize
    out_bytes = B * out_dim * x.dtype.itemsize
    w_bytes = (w1p.size * w1p.dtype.itemsize + b1p.size * b1p.dtype.itemsize
               + w2p.size * w2p.dtype.itemsize + b2.size * b2.dtype.itemsize)
    cost = pl.CostEstimate(
        flops=2 * B * input_dim * inter_p + 2 * B * inter_p * out_p,
        transcendentals=0,
        bytes_accessed=x_bytes + w_bytes + out_bytes,
    )

    return pl.pallas_call(
        _mlp_kernel,
        out_shape=jax.ShapeDtypeStruct((B, out_dim), x.dtype),
        grid=grid,
        in_specs=[
            pl.BlockSpec((tb, input_dim), lambda i: (i, 0)),        # x: tiled over batch
            pl.BlockSpec((input_dim, inter_p), lambda i: (0, 0)),   # w1: VMEM-resident
            pl.BlockSpec((1, inter_p), lambda i: (0, 0)),           # b1: VMEM-resident
            pl.BlockSpec((inter_p, out_p), lambda i: (0, 0)),       # w2: VMEM-resident
            pl.BlockSpec((1, out_dim), lambda i: (0, 0)),           # b2: VMEM-resident
        ],
        out_specs=pl.BlockSpec((tb, out_dim), lambda i: (i, 0)),    # unpadded output
        compiler_params=pltpu.CompilerParams(
            dimension_semantics=("parallel",),   # shards batch tiles across TCs on v7x
        ),
        cost_estimate=cost,
    )(x, w1p, b1p, w2p, b2)


def init_params(key, input_dim, output_dim, w_range=0.1, dtype=jnp.float32):
    """Parameter init mirroring the module's shapes.
       layer_1: Linear(input_dim, intermediate), PyTorch-style uniform init.
       milp_model's NamedLinear(intermediate, output_dim): uniform in [-w_range, w_range]."""
    intermediate = (input_dim + output_dim) // 2
    k1, k2, k3, k4 = jax.random.split(key, 4)
    bound1 = 1.0 / jnp.sqrt(input_dim)
    # Stored already transposed: (in_dim, out_dim)
    w1 = jax.random.uniform(k1, (input_dim, intermediate), dtype, -bound1, bound1)
    b1 = jax.random.uniform(k2, (1, intermediate), dtype, -bound1, bound1)
    w2 = jax.random.uniform(k3, (intermediate, output_dim), dtype, -w_range, w_range)
    b2 = jax.random.uniform(k4, (1, output_dim), dtype, -w_range, w_range)
    return w1, b1, w2, b2


if __name__ == "__main__":
    key = jax.random.PRNGKey(0)
    batch, input_dim, output_dim = 8, 32, 8        # intermediate = (32 + 8) // 2 = 20
    kx, kp = jax.random.split(key)
    x = jax.random.normal(kx, (batch, input_dim), jnp.float32)
    w1, b1, w2, b2 = init_params(kp, input_dim, output_dim, w_range=0.1)

    out = jax.block_until_ready(simple_classification_forward(x, w1, b1, w2, b2))

    # Pure-JAX reference of the same semantics (unpadded params).
    ref = jnp.maximum(x @ w1 + b1, 0.0) @ w2 + b2
    assert out.shape == (batch, output_dim)
    assert jnp.allclose(out, ref, atol=1e-5, rtol=1e-5)

    # Multi-step grid + partial last block (B not a multiple of the tile),
    # exercising the no-pad batch-tail masking path.
    big_B = 1000
    xb = jax.random.normal(kx, (big_B, input_dim), jnp.float32)
    out_b = jax.block_until_ready(
        simple_classification_forward(xb, w1, b1, w2, b2, tile_b=256))
    ref_b = jnp.maximum(xb @ w1 + b1, 0.0) @ w2 + b2
    assert out_b.shape == (big_B, output_dim)
    assert jnp.allclose(out_b, ref_b, atol=1e-4, rtol=1e-4)

    # Default (large) tile path: tile capped at ceil(B/2) -> 2-step parallel grid.
    out_c = jax.block_until_ready(simple_classification_forward(xb, w1, b1, w2, b2))
    assert jnp.allclose(out_c, ref_b, atol=1e-4, rtol=1e-4)

    print("KERNEL_OK")
</pallas_src>

<mosaic_0001>
module attributes {stable_mosaic.version = 11 : i64} {
  func.func @_mlp_kernel(%arg0: i32, %arg1: memref<8x32xf32, #tpu.memory_space<vmem>>, %arg2: memref<32x128xf32, #tpu.memory_space<vmem>>, %arg3: memref<1x128xf32, #tpu.memory_space<vmem>>, %arg4: memref<128x128xf32, #tpu.memory_space<vmem>>, %arg5: memref<1x8xf32, #tpu.memory_space<vmem>>, %arg6: memref<8x8xf32, #tpu.memory_space<vmem>>) attributes {dimension_semantics = [#tpu.dimension_semantics<parallel>], iteration_bounds = array<i64: 1>, scalar_prefetch = 0 : i64, scratch_operands = 0 : i64, tpu.core_type = #tpu.core_type<tc>, window_params = [{transform_indices = @transform_0, window_bounds = array<i64: 8, 32>}, {pipeline_mode = #tpu.pipeline_mode<synchronous>, transform_indices = @transform_1, window_bounds = array<i64: 32, 128>}, {pipeline_mode = #tpu.pipeline_mode<synchronous>, transform_indices = @transform_2, window_bounds = array<i64: 1, 128>}, {pipeline_mode = #tpu.pipeline_mode<synchronous>, transform_indices = @transform_3, window_bounds = array<i64: 128, 128>}, {pipeline_mode = #tpu.pipeline_mode<synchronous>, transform_indices = @transform_4, window_bounds = array<i64: 1, 8>}, {transform_indices = @transform_5, window_bounds = array<i64: 8, 8>}]} {
    %c0 = arith.constant 0 : index
    %c0_0 = arith.constant 0 : index
    %0 = vector.load %arg1[%c0, %c0_0] : memref<8x32xf32, #tpu.memory_space<vmem>>, vector<8x32xf32>
    %c0_1 = arith.constant 0 : index
    %c0_2 = arith.constant 0 : index
    %1 = vector.load %arg2[%c0_1, %c0_2] : memref<32x128xf32, #tpu.memory_space<vmem>>, vector<32x128xf32>
    %cst = arith.constant dense<0.000000e+00> : vector<8x128xf32>
    %2 = tpu.matmul %0, %1, %cst {dimension_numbers = #tpu.dot_dimension_numbers<[1], [0], [0], [1], [0, 0, 1, 1], [], []>} : vector<8x32xf32>, vector<32x128xf32>, vector<8x128xf32> -> vector<8x128xf32>
    %c0_3 = arith.constant 0 : index
    %c0_4 = arith.constant 0 : index
    %3 = vector.load %arg3[%c0_3, %c0_4] : memref<1x128xf32, #tpu.memory_space<vmem>>, vector<1x128xf32>
    %4 = vector.broadcast %3 : vector<1x128xf32> to vector<8x128xf32>
    %5 = arith.addf %2, %4 : vector<8x128xf32>
    %cst_5 = arith.constant 0.000000e+00 : f32
    %6 = vector.broadcast %cst_5 : f32 to vector<8x128xf32>
    %7 = arith.maximumf %5, %6 : vector<8x128xf32>
    %c0_6 = arith.constant 0 : index
    %c0_7 = arith.constant 0 : index
    %8 = vector.load %arg4[%c0_6, %c0_7] : memref<128x128xf32, #tpu.memory_space<vmem>>, vector<128x128xf32>
    %cst_8 = arith.constant dense<0.000000e+00> : vector<8x128xf32>
    %9 = tpu.matmul %7, %8, %cst_8 {dimension_numbers = #tpu.dot_dimension_numbers<[1], [0], [0], [1], [0, 0, 1, 1], [], []>} : vector<8x128xf32>, vector<128x128xf32>, vector<8x128xf32> -> vector<8x128xf32>
    %10 = vector.extract_strided_slice %9 {offsets = [0, 0], sizes = [8, 8], strides = [1, 1]} : vector<8x128xf32> to vector<8x8xf32>
    %c0_9 = arith.constant 0 : index
    %c0_10 = arith.constant 0 : index
    %11 = vector.load %arg5[%c0_9, %c0_10] : memref<1x8xf32, #tpu.memory_space<vmem>>, vector<1x8xf32>
    %12 = vector.broadcast %11 : vector<1x8xf32> to vector<8x8xf32>
    %13 = arith.addf %10, %12 : vector<8x8xf32>
    %c0_11 = arith.constant 0 : index
    %c0_12 = arith.constant 0 : index
    %14 = vector.load %arg6[%c0_11, %c0_12] : memref<8x8xf32, #tpu.memory_space<vmem>>, vector<8x8xf32>
    tpu.vector_store %arg6[%c0_11, %c0_12], %13 {strides = array<i32>} : memref<8x8xf32, #tpu.memory_space<vmem>>, vector<8x8xf32>,
    return
  }
  func.func @transform_0(%arg0: i32) -> (i32, i32) {
    %c0_i32 = arith.constant 0 : i32
    %c0_i32_0 = arith.constant 0 : i32
    return %arg0, %c0_i32 : i32, i32
  }
  func.func @transform_1(%arg0: i32) -> (i32, i32) {
    %c0_i32 = arith.constant 0 : i32
    %c0_i32_0 = arith.constant 0 : i32
    %c0_i32_1 = arith.constant 0 : i32
    return %c0_i32, %c0_i32_0 : i32, i32
  }
  func.func @transform_2(%arg0: i32) -> (i32, i32) {
    %c0_i32 = arith.constant 0 : i32
    %c0_i32_0 = arith.constant 0 : i32
    %c0_i32_1 = arith.constant 0 : i32
    return %c0_i32, %c0_i32_0 : i32, i32
  }
  func.func @transform_3(%arg0: i32) -> (i32, i32) {
    %c0_i32 = arith.constant 0 : i32
    %c0_i32_0 = arith.constant 0 : i32
    %c0_i32_1 = arith.constant 0 : i32
    return %c0_i32, %c0_i32_0 : i32, i32
  }
  func.func @transform_4(%arg0: i32) -> (i32, i32) {
    %c0_i32 = arith.constant 0 : i32
    %c0_i32_0 = arith.constant 0 : i32
    %c0_i32_1 = arith.constant 0 : i32
    return %c0_i32, %c0_i32_0 : i32, i32
  }
  func.func @transform_5(%arg0: i32) -> (i32, i32) {
    %c0_i32 = arith.constant 0 : i32
    %c0_i32_0 = arith.constant 0 : i32
    return %arg0, %c0_i32 : i32, i32
  }
}

</mosaic_0001>

<bundles_post_ra>
// kernel: simple_classification_forward.1
= control target key start
LH: loop header
LB: loop body
LE: loop exit
PB: predicated region body
PF: predicated region fallthrough
CT: control target
= control target key end

     0   :  { %v347_v3 = vmov 0.0|0.0   ;;  %vm348_vm0 = vmmov 0   ;;  %v349_v6 = vmov 0.0   ;;  %s462_s0 = inlined_call_operand.vmem [shape: f32[8,32], index: 0, kind: input, shape index: {}]   ;;  %s463_s1 = inlined_call_operand.vmem [shape: f32[32,128], index: 1, kind: input, shape index: {}]   ;;  %s464_s2 = inlined_call_operand.vmem [shape: f32[1,128], index: 2, kind: input, shape index: {}]   ;;  %s465_s3 = inlined_call_operand.vmem [shape: f32[128,128], index: 3, kind: input, shape index: {}]   ;;  %s466_s4 = inlined_call_operand.vmem [shape: f32[1,8], index: 4, kind: input, shape index: {}]   ;;  %s467_s5 = inlined_call_operand.hbm [shape: f32[8,8], index: 5, kind: output, shape index: {}]  }
   0x1   :  { %v22_v0 = vld [vmem:[%s463_s1] sm:$0xff]  ;;  %v23_v1 = vld [vmem:[%s463_s1 + $0x8] sm:$0xff]  ;;  %v24_v2 = vld [vmem:[%s463_s1 + $0x10] sm:$0xff]  ;;  %289 = vmatprep.subr.bf16.mxu0 %v347_v3  ;;  %251 = vmatprep.mubr.msk.f32.mxu0 %vm348_vm0, %v349_v6 }
   0x2   :  { %v290_v4 = vpack.c.bf16 %v23_v1, %v22_v0  ;;  %v25_v5 = vld [vmem:[%s463_s1 + $0x18] sm:$0xff]  ;;  %v108_v7 = vld [vmem:[%s465_s3] sm:$0xff]  ;;  %295 = vmatprep.subr.bf16.mxu1 %v347_v3  ;;  %v109_v8 = vld [vmem:[%s465_s3 + $0x8] sm:$0xff]  ;;  %286 = vmatprep.mubr.msk.f32.mxu1 %vm348_vm0, %v349_v6 }
   0x3   :  { %v110_v9 = vld [vmem:[%s465_s3 + $0x10] sm:$0xff]  ;;  %v111_v10 = vld [vmem:[%s465_s3 + $0x18] sm:$0xff]  ;;  %v293_v11 = vpack.c.bf16 %v25_v5, %v24_v2  ;;  %v296_v12 = vpack.c.bf16 %v109_v8, %v108_v7  ;;  %v112_v14 = vld [vmem:[%s465_s3 + $0x20] sm:$0xff] }
   0x4   :  { %291 = vmatpush3.bf16.msra.mxu0 %v290_v4  ;;  %v299_v13 = vpack.c.bf16 %v111_v10, %v110_v9  ;;  %v113_v15 = vld [vmem:[%s465_s3 + $0x28] sm:$0xff] }
   0x5   :  { %292 = vmatprep.subr.bf16.mxu0 %v347_v3  ;;  %297 = vmatpush3.bf16.msra.mxu1 %v296_v12 }
   0x6   :  { %298 = vmatprep.subr.bf16.mxu1 %v347_v3 }
   0x7   :  { %10 = vsyncpa [#allocation3], 0  ;;  %v21_v16 = vld [vmem:[%s462_s0] sm:$0xff]  ;;  %vm33_vm1 = vcmask 261120   ;;  %v302_v17 = vpack.c.bf16 %v113_v15, %v112_v14  ;;  %v114_v18 = vld [vmem:[%s465_s3 + $0x30] sm:$0xff]  ;;  %s350_s11 = smov [#allocation2]  }
   0x8   :  { %294 = vmatpush3.bf16.msra.mxu0 %v293_v11  ;;  %v115_v19 = vld [vmem:[%s465_s3 + $0x38] sm:$0xff]  ;;  %v116_v21 = vld [vmem:[%s465_s3 + $0x40] sm:$0xff]  ;;  %v117_v22 = vld [vmem:[%s465_s3 + $0x48] sm:$0xff]  ;;  %s210_s12 = sshll.u32 %s350_s11, 4  ;;  %vm202_vm2 = vcmask 64512   ;;  %s211_s12 = int_to_ptr.vmem [resolvable:$true] %s210_s12 }
   0x9   :  { %300 = vmatpush3.bf16.msra.mxu1 %v299_v13  ;;  %v305_v20 = vpack.c.bf16 %v115_v19, %v114_v18  ;;  %v308_v23 = vpack.c.bf16 %v117_v22, %v116_v21  ;;  %v118_v24 = vld [vmem:[%s465_s3 + $0x50] sm:$0xff]  ;;  %v119_v25 = vld [vmem:[%s465_s3 + $0x58] sm:$0xff]  ;;  %v120_v27 = vld [vmem:[%s465_s3 + $0x60] sm:$0xff]  ;;  %p328_p1 = scmp.lt.s32.totalorder %s211_s12, %s211_s12 }
   0xa   :  { %301 = vmatprep.subr.bf16.mxu1 %v347_v3  ;;  %v311_v26 = vpack.c.bf16 %v119_v25, %v118_v24  ;;  %v121_v28 = vld [vmem:[%s465_s3 + $0x68] sm:$0xff]  ;;  %v122_v30 = vld [vmem:[%s465_s3 + $0x70] sm:$0xff]  ;;  %v123_v31 = vld [vmem:[%s465_s3 + $0x78] sm:$0xff]  ;;  %s323_s3 = scalar_lea.vmem %s211_s12, 128 }
   0xb   :  { %252 = vmatmul.mubr.msk.f32.vlgmr.msra.gmra.mrb[0].mxu0 %vm33_vm1, %v21_v16  ;;  %v314_v29 = vpack.c.bf16 %v121_v28, %v120_v27  ;;  %v317_v32 = vpack.c.bf16 %v123_v31, %v122_v30  ;;  %v218_v33 = vld [vmem:[%s464_s2] ss:$0 sm:$0xff]  ;;  %p324_p0 = scmp.ne.s32.totalorder %s211_s12, %s323_s3  ;;  %p329_p2 = scmp.lt.s32.totalorder %s323_s3, %s323_s3 }
   0xc   :  { %v220_v38 = vld [vmem:[%s466_s4] ss:$0 sm:$0xff] }
   0xd   :  { %303 = vmatpush3.bf16.msra.mxu1 %v302_v17  ;;  %p330_p3 = por %p329_p2, %p328_p1 }
   0xe   :  { %304 = vmatprep.subr.bf16.mxu1 %v347_v3 }
   0xf   :  { %p331_p4 = pnand %p330_p3, %p324_p0 }
  0x11   :  { %306 = vmatpush3.bf16.msra.mxu1 %v305_v20 }
  0x12   :  { %307 = vmatprep.subr.bf16.mxu1 %v347_v3 }
  0x15   :  { %309 = vmatpush3.bf16.msra.mxu1 %v308_v23 }
  0x16   :  { %310 = vmatprep.subr.bf16.mxu1 %v347_v3 }
  0x19   :  { %312 = vmatpush3.bf16.msra.mxu1 %v311_v26 }
  0x1a   :  { %313 = vmatprep.subr.bf16.mxu1 %v347_v3 }
  0x1d   :  { %315 = vmatpush3.bf16.msra.mxu1 %v314_v29 }
  0x1e   :  { %316 = vmatprep.subr.bf16.mxu1 %v347_v3 }
  0x21   :  { %318 = vmatpush3.bf16.msra.mxu1 %v317_v32 }
  0xde   :  { %v103_v34 = vpop.f32.mrb[0].mxu0 }
  0xdf   :  { %v104_v35 = vadd.f32 %v218_v33, %v103_v34  ;;  %v253_v36 = vpop.f32.mrb[1].mxu0 }
  0xe1   :  { %v107_v37 = vmax.f32 %v104_v35, 0.0 }
  0xe3   :  { %287 = vmatmul.mubr.f32.vlgmr.msra.gmra.mrb[0].mxu1 %v107_v37 }
 0x1b6   :  { %v190_v39 = vpop.f32.mrb[0].mxu1 }
 0x1b7   :  { %v201_v40 = vadd.f32 %v220_v38, %v190_v39  ;;  %v288_v41 = vpop.f32.mrb[1].mxu1 }
 0x1b9   :  { %203 = vst.msk [vmem:[#allocation2] sm:$0xff] %vm202_vm2, %v201_v40 }
 0x1ba   :  { %334 = shalt.err (!%p331_p4)
}
 0x1bb   :  { %s335_s14 = scalar_lea.hbm %s467_s5, 128 }
 0x1bc   :  { %p336_p5 = scmp.ne.s32.totalorder %s467_s5, %s335_s14  ;;  %p339_p6 = scmp.lt.u32.totalorder %s335_s14, %s467_s5 }
 0x1be   :  { %p341_p7 = pnand %p339_p6, %p336_p5 }
 0x1c0   :  { %344 = shalt.err (!%p341_p7)
}
 0x1c1   :  { %213 = dma.vmem_to_hbm [thread:$0]  %s211_s12, 128, %s467_s5, [#allocation3]  }
 0x1c2   :  { %345 = dma.done.wait [#allocation3], 128  }
 0x1c3   :  { %346 = vsyncadd [#allocation3], 4294967168 }
 0x1c4   :  { %217 = vsyncpa [#allocation3], 1 }

</bundles_post_ra>
